<compile_context>
chip_gen: v7x
topology: tpu7x:2x2x1
jax: 0.10.0
libtpu: 0.0.40
codegen_flags: <defaults>
</compile_context>

<pallas_src>
import jax
import jax.numpy as jnp
from jax.experimental import pallas as pl
from jax.experimental.pallas import tpu as pltpu


def _sigmoid_linear_kernel(x_ref, w_ref, b_ref, o_ref):
    # x_ref: (TILE_ROWS, LANES) f32 tile in VMEM; w_ref/b_ref: (1,1) SMEM scalars.
    w = w_ref[0, 0]
    b = b_ref[0, 0]
    z = x_ref[...] * w + b                 # Linear(1, 1): elementwise w*x + b
    o_ref[...] = jax.nn.sigmoid(z)         # exp + reciprocal -> EUP slot


def _pallas_sigmoid_linear(x2d, w, b, tile_rows, lanes):
    rows = x2d.shape[0]
    grid = (rows // tile_rows,)
    return pl.pallas_call(
        _sigmoid_linear_kernel,
        out_shape=jax.ShapeDtypeStruct((rows, lanes), jnp.float32),
        grid=grid,
        in_specs=[
            pl.BlockSpec((tile_rows, lanes), lambda i: (i, 0)),
            pl.BlockSpec((1, 1), lambda i: (0, 0),
                         memory_space=pltpu.MemorySpace.SMEM),
            pl.BlockSpec((1, 1), lambda i: (0, 0),
                         memory_space=pltpu.MemorySpace.SMEM),
        ],
        out_specs=pl.BlockSpec((tile_rows, lanes), lambda i: (i, 0)),
        compiler_params=pltpu.CompilerParams(
            dimension_semantics=("parallel",),
        ),
    )(x2d, w, b)


def logistic_forward(x, w, b, *, tile_rows=256, lanes=1024,
                     min_kernel_elems=2048):
    """y = sigmoid(x @ W^T + b) for Linear(1, 1).

    x: (..., 1) f32 (any leading shape; 1 feature), w: (1, 1), b: (1, 1).
    Returns f32 with the same shape as x.
    """
    x = jnp.asarray(x, jnp.float32)
    w = jnp.asarray(w, jnp.float32).reshape(1, 1)
    b = jnp.asarray(b, jnp.float32).reshape(1, 1)
    orig_shape = x.shape
    n = x.size

    # Sub-vreg workloads: kernel launch + grid-step overhead dominates; a
    # fused XLA elementwise op is strictly faster at this size.
    if n < min_kernel_elems:
        return jax.nn.sigmoid(x * w[0, 0] + b[0, 0]).reshape(orig_shape)

    # Lane-dense slab: pad the flat length to a multiple of tile_rows*lanes
    # and view it as (rows, lanes). Padded tail is sliced off before return.
    flat = x.reshape(-1)
    tile_elems = tile_rows * lanes
    padded = ((n + tile_elems - 1) // tile_elems) * tile_elems
    if padded != n:
        flat = jnp.pad(flat, (0, padded - n))
    x2d = flat.reshape(padded // lanes, lanes)

    y2d = _pallas_sigmoid_linear(x2d, w, b, tile_rows, lanes)
    return y2d.reshape(-1)[:n].reshape(orig_shape)


if __name__ == "__main__":
    key = jax.random.PRNGKey(0)
    kx, kw, kb, kx2 = jax.random.split(key, 4)

    # torch.nn.Linear(1, 1) init: weight, bias ~ U(-1/sqrt(1), 1/sqrt(1)).
    w = jax.random.uniform(kw, (1, 1), jnp.float32, minval=-1.0, maxval=1.0)
    b = jax.random.uniform(kb, (1, 1), jnp.float32, minval=-1.0, maxval=1.0)

    # (a) Tiny input (batch=8, 1 feature): takes the fused-XLA fast path.
    x_small = jax.random.normal(kx, (8, 1), jnp.float32)
    y_small = jax.block_until_ready(logistic_forward(x_small, w, b))
    ref_small = jax.nn.sigmoid(x_small @ w.T + b[0])
    assert y_small.shape == (8, 1)
    assert jnp.allclose(y_small, ref_small, atol=1e-6), "small-path mismatch"

    # (b) Pallas path: modest shapes but a multi-step pipelined grid; the
    # ragged N (not a tile multiple) exercises the pad-and-slice handling.
    n = 8 * 256 * 3 + 7                       # 6151 samples, 1 feature
    x_big = jax.random.normal(kx2, (n, 1), jnp.float32)
    y_big = jax.block_until_ready(
        logistic_forward(x_big, w, b, tile_rows=8, lanes=256))
    ref_big = jax.nn.sigmoid(x_big @ w.T + b[0])
    assert y_big.shape == (n, 1)
    assert jnp.allclose(y_big, ref_big, atol=1e-6), "pallas-path mismatch"

    print("KERNEL_OK")
</pallas_src>

<mosaic_0001>
module attributes {stable_mosaic.version = 11 : i64} {
  func.func @_sigmoid_linear_kernel(%arg0: i32, %arg1: memref<8x256xf32, #tpu.memory_space<vmem>>, %arg2: memref<1x1xf32, #tpu.memory_space<smem>>, %arg3: memref<1x1xf32, #tpu.memory_space<smem>>, %arg4: memref<8x256xf32, #tpu.memory_space<vmem>>) attributes {dimension_semantics = [#tpu.dimension_semantics<parallel>], iteration_bounds = array<i64: 4>, scalar_prefetch = 0 : i64, scratch_operands = 0 : i64, tpu.core_type = #tpu.core_type<tc>, window_params = [{transform_indices = @transform_0, window_bounds = array<i64: 8, 256>}, {transform_indices = @transform_1, window_bounds = array<i64: 1, 1>}, {transform_indices = @transform_2, window_bounds = array<i64: 1, 1>}, {transform_indices = @transform_3, window_bounds = array<i64: 8, 256>}]} {
    %c0 = arith.constant 0 : index
    %c0_0 = arith.constant 0 : index
    %0 = memref.load %arg2[%c0, %c0_0] : memref<1x1xf32, #tpu.memory_space<smem>>
    %c0_1 = arith.constant 0 : index
    %c0_2 = arith.constant 0 : index
    %1 = memref.load %arg3[%c0_1, %c0_2] : memref<1x1xf32, #tpu.memory_space<smem>>
    %c0_3 = arith.constant 0 : index
    %c0_4 = arith.constant 0 : index
    %2 = vector.load %arg1[%c0_3, %c0_4] : memref<8x256xf32, #tpu.memory_space<vmem>>, vector<8x256xf32>
    %3 = vector.broadcast %0 : f32 to vector<8x256xf32>
    %4 = arith.mulf %2, %3 : vector<8x256xf32>
    %5 = vector.broadcast %1 : f32 to vector<8x256xf32>
    %6 = arith.addf %4, %5 : vector<8x256xf32>
    %7 = arith.negf %6 : vector<8x256xf32>
    %8 = math.exp %7 : vector<8x256xf32>
    %cst = arith.constant 1.000000e+00 : f32
    %9 = vector.broadcast %cst : f32 to vector<8x256xf32>
    %10 = arith.addf %9, %8 : vector<8x256xf32>
    %11 = arith.divf %9, %10 : vector<8x256xf32>
    %c0_5 = arith.constant 0 : index
    %c0_6 = arith.constant 0 : index
    %12 = vector.load %arg4[%c0_5, %c0_6] : memref<8x256xf32, #tpu.memory_space<vmem>>, vector<8x256xf32>
    tpu.vector_store %arg4[%c0_5, %c0_6], %11 {strides = array<i32>} : memref<8x256xf32, #tpu.memory_space<vmem>>, vector<8x256xf32>,
    return
  }
  func.func @transform_0(%arg0: i32) -> (i32, i32) {
    %c0_i32 = arith.constant 0 : i32
    %c0_i32_0 = arith.constant 0 : i32
    return %arg0, %c0_i32 : i32, i32
  }
  func.func @transform_1(%arg0: i32) -> (i32, i32) {
    %c0_i32 = arith.constant 0 : i32
    %c0_i32_0 = arith.constant 0 : i32
    %c0_i32_1 = arith.constant 0 : i32
    return %c0_i32, %c0_i32_0 : i32, i32
  }
  func.func @transform_2(%arg0: i32) -> (i32, i32) {
    %c0_i32 = arith.constant 0 : i32
    %c0_i32_0 = arith.constant 0 : i32
    %c0_i32_1 = arith.constant 0 : i32
    return %c0_i32, %c0_i32_0 : i32, i32
  }
  func.func @transform_3(%arg0: i32) -> (i32, i32) {
    %c0_i32 = arith.constant 0 : i32
    %c0_i32_0 = arith.constant 0 : i32
    return %arg0, %c0_i32 : i32, i32
  }
}

</mosaic_0001>

<bundles_post_ra>
// kernel: tpu_custom_call.1
= control target key start
LH: loop header
LB: loop body
LE: loop exit
PB: predicated region body
PF: predicated region fallthrough
CT: control target
= control target key end

     0   :  { %s655_s0 = inlined_call_operand.hbm [shape: f32[32,256], index: 0, kind: input, shape index: {}]   ;;  %s656_s1 = inlined_call_operand.<no memory space> [shape: f32[1,1], index: 1, kind: input, shape index: {}]   ;;  %s657_s2 = inlined_call_operand.<no memory space> [shape: f32[1,1], index: 2, kind: input, shape index: {}]   ;;  %s658_s3 = inlined_call_operand.hbm [shape: f32[32,256], index: 3, kind: output, shape index: {}]  }
   0x1   :  { %8 = sst [smem:[#allocation2]] %s656_s1 }
   0x2   :  { %9 = sst [smem:[#allocation3]] %s657_s2 }
   0x3   :  { %10 = vsyncpa [#allocation5], 0 }
   0x4   :  { %12 = vsyncpa [#allocation5 + $0x1], 0 }
   0x5   :  { %13 = vsyncpa [#allocation6], 0 }
   0x6   :  { %15 = vsyncpa [#allocation6 + $0x1], 0  ;;  %s496_s16 = smov 0   ;;  %s498_s17 = smov 0  }
   0x7   :  { %s500_s18 = smov 0   ;;  %s502_s19 = smov 0  }
   0x8 LB: > { %s517_s1 = sadd.s32 4294967295, %s466_s19   ;;  %s298_s2 = sadd.s32 4294967294, %s466_s19   ;;  %s466_s19 = sphi %s502_s19, %s672_s19   ;;  %s462_s18 = sphi %s500_s18, %s671_s18   ;;  %s458_s17 = sphi %s498_s17, %s670_s17   ;;  %s454_s16 = sphi %s496_s16, %s669_s16  }
   0x9   : > { %s521_s20 = sadd.s32 1, %s466_s19   ;;  %s28_s21 = sadd.s32 1, %s462_s18 }
   0xa   : > { %s25_s22 = ssub.s32 %s466_s19, %s521_s20  ;;  %p35_p0 = scmp.ne.s32.totalorder %s462_s18, %s458_s17 }
   0xb   : > { %p26_p1 = scmp.eq.s32.totalorder %s25_s22, 0  ;;  %p36_p2 = scmp.eq.s32.totalorder %s466_s19, 0 }
   0xc   : > { %p41_p3 = scmp.ne.s32.totalorder %s458_s17, %s454_s16  ;;  %p42_p4 = scmp.eq.s32.totalorder %s517_s1, 0 }
   0xd   : > { %s533_s23 = scalar_select %p26_p1, %s462_s18, %s28_s21  }
   0xe   : > { %p535_p5 = por %p36_p2, %p35_p0  ;;  %p539_p6 = por %p42_p4, %p41_p3 }
   0xf   : > { %p107_p7 = scmp.eq.s32.totalorder %s517_s1, 3  ;;  %p113_p8 = scmp.eq.s32.totalorder %s298_s2, 3 }
  0x10   : > { %p328_p9 = scmp.lt.s32.totalorder %s466_s19, 4  ;;  %s139_s28 = sand.u32 1, %s462_s18  }
  0x11   : > { %p545_p10 = por %p107_p7, %p35_p0  ;;  %p549_p11 = por %p113_p8, %p41_p3 }
  0x12   : > { %s314_s29 = sshll.u32 %s466_s19, 8  ;;  %s301_s30 = sshll.u32 %s139_s28, 4 }
  0x13   : > { %s662_s26 = scalar_select %p545_p10, 1, 0 }
  0x14   : > { %s663_s27 = scalar_select %p549_p11, 1, 0 }
  0x15   : > { %s558_s6 = scalar_lea.hbm %s655_s0, %s314_s29  ;;  %s143_s7 = scalar_lea.vmem [#allocation4], %s301_s30 }
  0x16   : > { %s151_s8 = sshll.u32 %s143_s7, 4  ;;  %p562_p12 = pnand %p328_p9, %p535_p5  ;;  %s566_s8 = int_to_ptr.vmem [resolvable:$true] %s151_s8 }
  0x17   : > { %s140_s10 = scalar_lea.sflag [#allocation5], %s139_s28  ;;  %s370_s11 = scalar_lea.hbm %s558_s6, 256 }
  0x18   : > { %p371_p1 = scmp.ne.s32.totalorder %s558_s6, %s370_s11  ;;  %p372_p2 = pneg %p562_p12 }
  0x19   : > { %s375_s14 = scalar_lea.hbm %s655_s0, 1024  ;;  %p376_p5 = scmp.lt.u32.totalorder %s558_s6, %s655_s0 }
  0x1a   : > { %p373_p3 = pnand %p372_p2, %p371_p1  ;;  %p377_p7 = scmp.lt.u32.totalorder %s375_s14, %s370_s11 }
  0x1b   : > { %p379_p9 = scmp.lt.u32.totalorder %s370_s11, %s558_s6 }
  0x1c   : > { %p374_p4 = pneg %p373_p3  ;;  %p378_p8 = por %p377_p7, %p376_p5 }
  0x1e   : > { %p380_p13 = por %p379_p9, %p378_p8 }
  0x20   : > { %p381_p0 = pnand %p380_p13, %p374_p4 }
  0x22   : > { %384 = shalt.err (!%p381_p0)
}
  0x23   : > { %s385_s21 = scalar_lea.vmem %s566_s8, 256  ;;  %s468_s22 = smov [#allocation4]  }
  0x24   : > { %p386_p1 = scmp.ne.s32.totalorder %s566_s8, %s385_s21  ;;  %s390_s24 = sshll.u32 %s468_s22, 4  ;;  %s391_s24 = int_to_ptr.vmem [resolvable:$false] %s390_s24 }
  0x25   : > { %s392_s28 = scalar_lea.vmem %s391_s24, 512  ;;  %p393_p10 = scmp.lt.s32.totalorder %s566_s8, %s391_s24 }
  0x26   : > { %p388_p3 = pnand %p386_p1, %p372_p2  ;;  %p394_p5 = scmp.lt.s32.totalorder %s392_s28, %s385_s21 }
  0x28   : > { %p389_p11 = pneg %p388_p3  ;;  %p395_p7 = por %p394_p5, %p393_p10 }
  0x2a   : > { %p396_p8 = pnand %p395_p7, %p389_p11 }
  0x2c   : > { %399 = shalt.err (!%p396_p8)
}
  0x2d   : > { %323 = dma.hbm_to_vmem [thread:$0]  (!%p562_p12), %s558_s6, 256, %s566_s8, %s140_s10  }
  0x2e   : > { %p665_p13 = scmp.lt.s32.totalorder %s466_s19, 5  ;;  %p666_p0 = scmp.ge.s32.totalorder %s466_s19, 1 }
  0x30   : > { %p157_p2 = pnand %p666_p0, %p665_p13 }
  0x31   : > { %s600_s29 = sand.u32 (!%p157_p2), 1, %s458_s17  }
  0x32   : > { %160 = sbr.rel (%p157_p2) target bundleno = 110 (0x6e), region = 32  ;;  %s305_s30 = sshll.u32 (!%p157_p2), %s600_s29, 4 }
  0x33   : > { %s163_s4 = scalar_lea.sflag (!%p157_p2), [#allocation5], %s600_s29  ;;  %s166_s5 = scalar_lea.vmem (!%p157_p2), [#allocation4], %s305_s30 }
  0x39   : > { %445 = dma.done.wait (%p539_p6), %s163_s4, 256  }
  0x3a   : > { %447 = vsyncadd (%p539_p6), %s163_s4, 4294967040  ;;  %s189_s7 = sld [smem:[#allocation2]]  ;;  %v191_v0 = vld [vmem:[%s166_s5] sm:$0xff]  ;;  %v192_v1 = vld [vmem:[%s166_s5 + $0x8] sm:$0xff]  ;;  %s188_s25 = scalar_lea.vmem [#allocation7], %s305_s30 }
  0x3b   : > { %s190_s6 = sld [smem:[#allocation3]]  ;;  %s228_s8 = sshll.u32 %s188_s25, 4  ;;  %s609_s8 = int_to_ptr.vmem [resolvable:$true] %s228_s8 }
  0x3c   : > { %s315_s9 = sshll.u32 %s517_s1, 8  ;;  %s214_s13 = scalar_lea.sflag [#allocation6], %s600_s29 }
  0x3d   : > { %s614_s12 = scalar_lea.hbm %s658_s3, %s315_s9  ;;  %s400_s14 = scalar_lea.vmem %s609_s8, 256 }
  0x3e   : > { %p401_p6 = scmp.ne.s32.totalorder %s609_s8, %s400_s14  ;;  %p667_p10 = scmp.ne.s32.totalorder %s662_s26, 0 }
  0x3f   : > { %s469_s1 = smov [#allocation7]  }
  0x40   : > { %v193_v2 = vstv %s189_s7  ;;  %p402_p11 = pnand %p401_p6, %p667_p10  ;;  %s404_s15 = sshll.u32 %s469_s1, 4  ;;  %s405_s15 = int_to_ptr.vmem [resolvable:$false] %s404_s15 }
  0x41   : > { %v196_v3 = vstv %s190_s6  ;;  %v194_v4 = vmul.f32 %v193_v2, %v191_v0  ;;  %v195_v5 = vmul.f32 %v193_v2, %v192_v1  ;;  %s406_s2 = scalar_lea.vmem %s405_s15, 512  ;;  %p407_p4 = scmp.lt.s32.totalorder %s609_s8, %s405_s15 }
  0x42   : > { %p403_p12 = pneg %p402_p11  ;;  %p408_p9 = scmp.lt.s32.totalorder %s406_s2, %s400_s14 }
  0x43   : > { %v197_v6 = vadd.f32 %v196_v3, %v194_v4  ;;  %v198_v7 = vadd.f32 %v196_v3, %v195_v5 }
  0x44   : > { %p409_p1 = por %p408_p9, %p407_p4 }
  0x45   : > { %v307_v8 = vmul.f32 -1.442695, %v197_v6  ;;  %v308_v9 = vmul.f32 -1.442695, %v198_v7 }
  0x46   : > { %p410_p3 = pnand %p409_p1, %p403_p12 }
  0x47   : > { %362 = vpow2.f32 %v307_v8 }
  0x48   : > { %364 = vpow2.f32 %v308_v9 }
  0x51   : > { %v363_v10 = vpop.eup %362 }
  0x52   : > { %v365_v11 = vpop.eup %364  ;;  %v205_v12 = vadd.f32 1.0, %v363_v10 }
  0x53   : > { %v206_v13 = vadd.f32 1.0, %v365_v11 }
  0x54   : > { %366 = vrcp.f32 %v205_v12 }
  0x55   : > { %368 = vrcp.f32 %v206_v13 }
  0x5e   : > { %v367_v14 = vpop.eup %366 }
  0x5f   : > { %v369_v15 = vpop.eup %368  ;;  %211 = vst [vmem:[%s188_s25] sm:$0xff] %v367_v14 }
  0x60   : > { %212 = vst [vmem:[%s188_s25 + $0x8] sm:$0xff] %v369_v15 }
  0x61   : > { %413 = shalt.err (!%p410_p3)
}
  0x62   : > { %s414_s21 = scalar_lea.hbm %s614_s12, 256  ;;  %s418_s28 = scalar_lea.hbm %s658_s3, 1024 }
  0x63   : > { %p415_p5 = scmp.ne.s32.totalorder %s614_s12, %s414_s21  ;;  %p419_p13 = scmp.lt.u32.totalorder %s614_s12, %s658_s3 }
  0x64   : > { %p420_p0 = scmp.lt.u32.totalorder %s418_s28, %s414_s21  ;;  %p422_p6 = scmp.lt.u32.totalorder %s414_s21, %s614_s12 }
  0x65   : > { %p416_p7 = pnand %p415_p5, %p667_p10 }
  0x66   : > { %p421_p2 = por %p420_p0, %p419_p13 }
  0x67   : > { %p417_p8 = pneg %p416_p7 }
  0x68   : > { %p423_p11 = por %p422_p6, %p421_p2 }
  0x6a   : > { %p424_p12 = pnand %p423_p11, %p417_p8 }
  0x6c   : > { %427 = shalt.err (!%p424_p12)
}
  0x6d   : > { %318 = dma.vmem_to_hbm [thread:$0]  (%p667_p10), %s609_s8, 256, %s614_s12, %s214_s13  }
  0x6e PF: > { %p329_p4 = scmp.ge.s32.totalorder %s466_s19, 2  ;;  %s240_s4 = sand.u32 1, %s454_s16  }
  0x6f   : > { %p668_p9 = scmp.ne.s32.totalorder %s663_s27, 0  ;;  %s241_s5 = scalar_lea.sflag [#allocation6], %s240_s4 }
  0x71   : > { %p325_p1 = pnand %p329_p4, %p668_p9 }
  0x73   : > { %449 = dma.done.wait (!%p325_p1), %s241_s5, 256  }
  0x74   : > { %451 = vsyncadd (!%p325_p1), %s241_s5, 4294967040  ;;  %p18_p3 = scmp.ge.s32.totalorder %s521_s20, 6   ;;  %s669_s16 = smov %s458_s17 }
  0x75   : > { %s670_s17 = smov %s462_s18  ;;  %s671_s18 = smov %s533_s23 }
  0x76   : > { %s672_s19 = smov %s521_s20  ;;  %20 = sbr.rel (!%p18_p3) target bundleno = 8 (0x8), region = 77 }
  0x7d   :  { %246 = vsyncpa [#allocation5], 1 }
  0x7e   :  { %248 = vsyncpa [#allocation5 + $0x1], 1 }
  0x7f   :  { %249 = vsyncpa [#allocation6], 1 }
  0x80   :  { %251 = vsyncpa [#allocation6 + $0x1], 1 }

</bundles_post_ra>
